<compile_context>
chip_gen: v7x
topology: tpu7x:2x2x1
jax: 0.10.0
libtpu: 0.0.40
codegen_flags: <defaults>
</compile_context>

<pallas_src>
import functools

import jax
import jax.numpy as jnp
from jax import lax
from jax.experimental import pallas as pl
from jax.experimental.pallas import tpu as pltpu

_BETA = 0.15          # hard-negative temperature used by reweight()
_EPS = 1e-07          # log() guard from the PyTorch module
_DENOM_FLOOR = 1e-30  # guards (row_sum - exp) underflowing to exactly 0
                      # (torch would produce inf there; documented deviation)

# dot_general dimension numbers for q @ k.T (contract the feature dim of both).
_DN_NT = (((1,), (1,)), ((), ()))


# ----------------------------------------------------------------------------
# hardware-aware sizing helpers
# ----------------------------------------------------------------------------
def _vmem_capacity_bytes():
    try:
        cap = getattr(pltpu.get_tpu_info(), "vmem_capacity_bytes", None)
        if cap:
            return int(cap)
    except Exception:
        pass
    return 128 << 20  # v5e / v6e; v7x (64 MiB) is picked up via get_tpu_info


def _vmem_limit_bytes():
    # Raise the scoped-VMEM ceiling (16/32 MiB default) so larger row tiles fit,
    # clamped to 3/4 of physical VMEM (96 MiB on v5e/v6e, 48 MiB on v7x).
    return int(_vmem_capacity_bytes() * 3 // 4)


def _pick_row_tile(b, bytes_per_row, *, pack=8, reserved=0):
    """Largest row tile: a divisor of b, multiple of `pack`, whose per-tile
    footprint (streamed input blocks x 2 pipeline buffers + f32 temporaries)
    stays within ~1/4 of this chip's VMEM minus `reserved` resident bytes."""
    budget = max((_vmem_capacity_bytes() // 4) - reserved, 1 << 20)
    max_tr = max(pack, budget // max(bytes_per_row, 1))
    if b <= max_tr:
        return b
    tr = (min(max_tr, b) // pack) * pack
    while tr >= pack:
        if b % tr == 0:
            return tr
        tr -= pack
    # TODO(synk): pad awkward batch sizes instead of falling back to full rows.
    return b


# ----------------------------------------------------------------------------
# shared per-tile epilogue
# ----------------------------------------------------------------------------
def _hn_tile(sim, rs_row, pos_mask, bs, tgt=None):
    """sum_{i in tile} sum_j targets[i, j] * log_prob[i, j] for one (tr, B) tile.

    Reproduces the module exactly, including the missing-keepdim broadcast in
    reweight(): denom[i, j] = rs_row[0, j] - exp(beta * s[i, j]), where
    rs_row[0, j] = sum_k exp(beta * (sim[j, k] - max_k sim[j, k])) comes from
    the separate row-sum pass.
    """
    sim = sim.astype(jnp.float32)
    s = sim - jnp.max(sim, axis=1, keepdims=True)          # row max (detached in torch)
    eb = jnp.exp(s * jnp.float32(_BETA))
    denom = jnp.maximum(rs_row.astype(jnp.float32) - eb, jnp.float32(_DENOM_FLOOR))
    # (bs-1)*eb / denom on the EUP via approx reciprocal (~1e-3 rel error on
    # negatives, washed out through the log; positives are overwritten with 1).
    w = jnp.float32(bs - 1) * eb * pl.reciprocal(denom, approx=True)
    w = jnp.where(pos_mask, jnp.float32(1.0), w)
    z = jnp.sum(w * jnp.exp(s), axis=1, keepdims=True)      # (tr, 1)
    logz = jnp.log(jnp.float32(_EPS) + z)                   # (tr, 1)
    if tgt is None:
        # identity targets: exactly one positive per row (the diagonal);
        # no one_hot materialization, no full-tile multiply.
        return jnp.sum(jnp.where(pos_mask, s, 0.0)) - jnp.sum(logz)
    tgt = tgt.astype(jnp.float32)
    return jnp.sum(tgt * s) - jnp.sum(jnp.sum(tgt, axis=1, keepdims=True) * logz)


# ----------------------------------------------------------------------------
# pass 1: per-row sums of exp(beta * (sim - rowmax))  (needed by reweight's
# keepdim-less broadcast, which couples every row tile to every row's sum)
# ----------------------------------------------------------------------------
def _rs_kernel(a2t_ref, t2a_ref, rs_a2t_ref, rs_t2a_ref):
    def one(sim_ref, out_ref):
        s = sim_ref[...].astype(jnp.float32)
        s = s - jnp.max(s, axis=1, keepdims=True)
        out_ref[...] = jnp.sum(jnp.exp(s * jnp.float32(_BETA)), axis=1, keepdims=True)
    one(a2t_ref, rs_a2t_ref)
    one(t2a_ref, rs_t2a_ref)


# ----------------------------------------------------------------------------
# pass 2: hard-negative weighted log-prob, one lane-dense partial per row tile
# ----------------------------------------------------------------------------
def _atc_loss_kernel(a2t_ref, t2a_ref, rs_a2t_ref, rs_t2a_ref, out_ref, *,
                     bs, tile_rows):
    i = pl.program_id(0)
    # identity targets generated in-kernel (no eye(B) DMA); mask hoisted once
    # and shared by both directions.
    row = lax.broadcasted_iota(jnp.int32, (tile_rows, bs), 0) + i * tile_rows
    col = lax.broadcasted_iota(jnp.int32, (tile_rows, bs), 1)
    is_pos = row == col
    p = (_hn_tile(a2t_ref[...], rs_a2t_ref[...], is_pos, bs)
         + _hn_tile(t2a_ref[...], rs_t2a_ref[...], is_pos, bs))
    out_ref[...] = jnp.full(out_ref.shape, p, dtype=jnp.float32)


def _atc_loss_kernel_targets(a2t_ref, t2a_ref, tgt_ref, rs_a2t_ref, rs_t2a_ref,
                             out_ref, *, bs):
    tgt = tgt_ref[...].astype(jnp.float32)
    pos = tgt > jnp.float32(0.0)
    p = (_hn_tile(a2t_ref[...], rs_a2t_ref[...], pos, bs, tgt=tgt)
         + _hn_tile(t2a_ref[...], rs_t2a_ref[...], pos, bs, tgt=tgt))
    out_ref[...] = jnp.full(out_ref.shape, p, dtype=jnp.float32)


# ----------------------------------------------------------------------------
# fused variant: (B, D) embeddings resident, each tile's sim block recomputed
# on the MXU in both passes (no (2B, B) sim / temporaries ever resident).
# ----------------------------------------------------------------------------
def _fused_rs_kernel(a_full_ref, t_full_ref, a_row_ref, t_row_ref,
                     rs_a2t_ref, rs_t2a_ref, *, scale):
    def one(q_rows_ref, k_full_ref, out_ref):
        sim = lax.dot_general(q_rows_ref[...], k_full_ref[...], _DN_NT,
                              preferred_element_type=jnp.float32) * jnp.float32(scale)
        s = sim - jnp.max(sim, axis=1, keepdims=True)
        out_ref[...] = jnp.sum(jnp.exp(s * jnp.float32(_BETA)), axis=1, keepdims=True)
    one(a_row_ref, t_full_ref, rs_a2t_ref)
    one(t_row_ref, a_full_ref, rs_t2a_ref)


def _fused_loss_kernel(a_full_ref, t_full_ref, a_row_ref, t_row_ref,
                       rs_a2t_ref, rs_t2a_ref, out_ref, *, bs, tile_rows, scale):
    i = pl.program_id(0)
    row = lax.broadcasted_iota(jnp.int32, (tile_rows, bs), 0) + i * tile_rows
    col = lax.broadcasted_iota(jnp.int32, (tile_rows, bs), 1)
    is_pos = row == col

    def sim_of(q_rows_ref, k_full_ref):
        return lax.dot_general(q_rows_ref[...], k_full_ref[...], _DN_NT,
                               preferred_element_type=jnp.float32) * jnp.float32(scale)

    p = (_hn_tile(sim_of(a_row_ref, t_full_ref), rs_a2t_ref[...], is_pos, bs)
         + _hn_tile(sim_of(t_row_ref, a_full_ref), rs_t2a_ref[...], is_pos, bs))
    out_ref[...] = jnp.full(out_ref.shape, p, dtype=jnp.float32)


# ----------------------------------------------------------------------------
# wrappers
# ----------------------------------------------------------------------------
def audio_text_contrastive_loss_hn(sim_a2t, sim_t2a, sim_targets=None, *,
                                   row_tile=None):
    """Pallas TPU implementation of AudioTextContrastiveLoss_HN.forward."""
    sim_a2t = jnp.asarray(sim_a2t)
    sim_t2a = jnp.asarray(sim_t2a)
    b = int(sim_a2t.shape[0])
    itemsize = sim_a2t.dtype.itemsize
    n_stream = 2 if sim_targets is None else 3
    pack = 8 if itemsize >= 4 else 16       # bf16 packs two rows per sublane
    if row_tile is not None:
        tr = int(row_tile)
        assert b % tr == 0, (b, tr)
    else:
        tr = _pick_row_tile(b, b * (2 * n_stream * itemsize + 10 * 4), pack=pack)
    nt = b // tr

    row_spec = pl.BlockSpec((tr, b), lambda i: (i, 0))
    rs_col_spec = pl.BlockSpec((tr, 1), lambda i: (i, 0))
    rs_row_spec = pl.BlockSpec((1, b), lambda i: (0, 0))      # resident
    cparams = pltpu.CompilerParams(dimension_semantics=("parallel",),
                                   vmem_limit_bytes=_vmem_limit_bytes())

    # pass 1: per-row sums (b floats per direction)
    rs_a2t, rs_t2a = pl.pallas_call(
        _rs_kernel,
        out_shape=(jax.ShapeDtypeStruct((b, 1), jnp.float32),
                   jax.ShapeDtypeStruct((b, 1), jnp.float32)),
        grid=(nt,),
        in_specs=[row_spec, row_spec],
        out_specs=(rs_col_spec, rs_col_spec),
        compiler_params=cparams,
        cost_estimate=pl.CostEstimate(flops=int(8 * b * b),
                                      transcendentals=int(2 * b * b),
                                      bytes_accessed=int(2 * b * b * itemsize + 8 * b)),
    )(sim_a2t, sim_t2a)
    rs_a2t = rs_a2t.reshape(1, b)   # lane-major for the row-broadcast in pass 2
    rs_t2a = rs_t2a.reshape(1, b)

    # pass 2: loss partials, one lane-dense (8, 128) block per row tile
    common = dict(
        out_shape=jax.ShapeDtypeStruct((nt, 8, 128), jnp.float32),
        grid=(nt,),
        out_specs=pl.BlockSpec((1, 8, 128), lambda i: (i, 0, 0)),
        compiler_params=cparams,
        cost_estimate=pl.CostEstimate(flops=int(40 * b * b),
                                      transcendentals=int(6 * b * b),
                                      bytes_accessed=int(n_stream * b * b * itemsize + 8 * b)),
    )
    if sim_targets is None:
        kernel = functools.partial(_atc_loss_kernel, bs=b, tile_rows=tr)
        part = pl.pallas_call(
            kernel, in_specs=[row_spec, row_spec, rs_row_spec, rs_row_spec],
            **common)(sim_a2t, sim_t2a, rs_a2t, rs_t2a)
    else:
        sim_targets = jnp.asarray(sim_targets)
        kernel = functools.partial(_atc_loss_kernel_targets, bs=b)
        part = pl.pallas_call(
            kernel, in_specs=[row_spec, row_spec, row_spec, rs_row_spec, rs_row_spec],
            **common)(sim_a2t, sim_t2a, sim_targets, rs_a2t, rs_t2a)

    # loss = (loss_a2t + loss_t2a) / 2 = -(sum of per-tile partials) / (2 * bs)
    return jnp.sum(part[:, 0, 0]) * jnp.float32(-0.5 / b)


def audio_text_contrastive_loss_hn_fused(audio_emb, text_emb, logit_scale=1.0, *,
                                         row_tile=None):
    """Fused variant: sim_a2t = scale * a @ t.T and sim_t2a = scale * t @ a.T are
    computed on the MXU inside the kernels (identity targets)."""
    a = jnp.asarray(audio_emb)
    t = jnp.asarray(text_emb)
    b, d = (int(s) for s in a.shape)
    itemsize = a.dtype.itemsize
    pack = 8 if itemsize >= 4 else 16
    if row_tile is not None:
        tr = int(row_tile)
        assert b % tr == 0, (b, tr)
    else:
        reserved = 4 * b * d * itemsize + 4 * b * 4   # resident embeddings + rs rows
        tr = _pick_row_tile(b, b * 10 * 4 + 4 * d * itemsize, pack=pack,
                            reserved=reserved)
    nt = b // tr
    scale = float(logit_scale)

    full_spec = pl.BlockSpec((b, d), lambda i: (0, 0))        # resident
    row_spec = pl.BlockSpec((tr, d), lambda i: (i, 0))
    rs_col_spec = pl.BlockSpec((tr, 1), lambda i: (i, 0))
    rs_row_spec = pl.BlockSpec((1, b), lambda i: (0, 0))      # resident
    cparams = pltpu.CompilerParams(dimension_semantics=("parallel",),
                                   vmem_limit_bytes=_vmem_limit_bytes())

    rs_a2t, rs_t2a = pl.pallas_call(
        functools.partial(_fused_rs_kernel, scale=scale),
        out_shape=(jax.ShapeDtypeStruct((b, 1), jnp.float32),
                   jax.ShapeDtypeStruct((b, 1), jnp.float32)),
        grid=(nt,),
        in_specs=[full_spec, full_spec, row_spec, row_spec],
        out_specs=(rs_col_spec, rs_col_spec),
        compiler_params=cparams,
        cost_estimate=pl.CostEstimate(flops=int(4 * b * b * d + 8 * b * b),
                                      transcendentals=int(2 * b * b),
                                      bytes_accessed=int(4 * b * d * itemsize + 8 * b)),
    )(a, t, a, t)
    rs_a2t = rs_a2t.reshape(1, b)
    rs_t2a = rs_t2a.reshape(1, b)

    part = pl.pallas_call(
        functools.partial(_fused_loss_kernel, bs=b, tile_rows=tr, scale=scale),
        out_shape=jax.ShapeDtypeStruct((nt, 8, 128), jnp.float32),
        grid=(nt,),
        in_specs=[full_spec, full_spec, row_spec, row_spec, rs_row_spec, rs_row_spec],
        out_specs=pl.BlockSpec((1, 8, 128), lambda i: (i, 0, 0)),
        compiler_params=cparams,
        cost_estimate=pl.CostEstimate(flops=int(4 * b * b * d + 40 * b * b),
                                      transcendentals=int(6 * b * b),
                                      bytes_accessed=int(4 * b * d * itemsize + 8 * b)),
    )(a, t, a, t, rs_a2t, rs_t2a)
    return jnp.sum(part[:, 0, 0]) * jnp.float32(-0.5 / b)


# ----------------------------------------------------------------------------
# pure-JAX reference (exact transcription of the PyTorch module, including the
# missing-keepdim broadcast inside reweight)
# ----------------------------------------------------------------------------
def _reference(sim_a2t, sim_t2a, sim_targets=None, beta=_BETA):
    sim_a2t = jnp.asarray(sim_a2t, dtype=jnp.float32)
    sim_t2a = jnp.asarray(sim_t2a, dtype=jnp.float32)
    b = sim_a2t.shape[0]
    if sim_targets is None:
        sim_targets = jnp.eye(b, dtype=jnp.float32)

    def reweight(s):
        eb = jnp.exp(s * beta)
        # torch: sum(eb, 1) has shape (b,) and broadcasts along rows, i.e.
        # denom[i, j] = sum_k eb[j, k] - eb[i, j].
        w = (b - 1) * eb / (jnp.sum(eb, axis=1) - eb)
        return jnp.where(sim_targets > 0, 1.0, w)

    def one(sim):
        s = sim - jnp.max(sim, axis=1, keepdims=True)
        w = reweight(s)
        lp = s - jnp.log(_EPS + jnp.sum(w * jnp.exp(s), axis=1, keepdims=True))
        return -jnp.mean(jnp.sum(sim_targets * lp, axis=1))

    return (one(sim_a2t) + one(sim_t2a)) / 2.0


if __name__ == "__main__":
    key = jax.random.PRNGKey(0)
    k1, k2, k3, k4, k5, k6 = jax.random.split(key, 6)
    TOL = dict(rtol=5e-3, atol=5e-3)   # absorbs the approx-reciprocal in reweight

    # 1) small batch, default (identity) targets, f32
    B = 8
    sim_a2t = jax.random.normal(k1, (B, B), dtype=jnp.float32) * 2.0
    sim_t2a = jax.random.normal(k2, (B, B), dtype=jnp.float32) * 2.0
    loss = jax.block_until_ready(audio_text_contrastive_loss_hn(sim_a2t, sim_t2a))
    ref = _reference(sim_a2t, sim_t2a)
    assert jnp.allclose(loss, ref, **TOL), ("identity", loss, ref)

    # 2) explicit (soft, multi-positive) targets
    soft_tgt = (0.7 * jnp.eye(B, dtype=jnp.float32)
                + 0.3 * jnp.roll(jnp.eye(B, dtype=jnp.float32), 1, axis=1))
    loss_t = jax.block_until_ready(
        audio_text_contrastive_loss_hn(sim_a2t, sim_t2a, soft_tgt))
    ref_t = _reference(sim_a2t, sim_t2a, soft_tgt)
    assert jnp.allclose(loss_t, ref_t, **TOL), ("targets", loss_t, ref_t)

    # 3) bf16 logits exercising the multi-tile parallel grid (forced row tile)
    B2 = 64
    sa = (jax.random.normal(k3, (B2, B2), dtype=jnp.float32) * 1.5).astype(jnp.bfloat16)
    st = (jax.random.normal(k4, (B2, B2), dtype=jnp.float32) * 1.5).astype(jnp.bfloat16)
    loss2 = jax.block_until_ready(
        audio_text_contrastive_loss_hn(sa, st, row_tile=16))
    ref2 = _reference(sa.astype(jnp.float32), st.astype(jnp.float32))
    assert jnp.allclose(loss2, ref2, **TOL), ("tiled_bf16", loss2, ref2)

    # 4) fused similarity matmul + loss from (B, D) bf16 embeddings, 2 row tiles
    B3, D = 32, 32
    ae = jax.random.normal(k5, (B3, D), dtype=jnp.float32).astype(jnp.bfloat16)
    te = jax.random.normal(k6, (B3, D), dtype=jnp.float32).astype(jnp.bfloat16)
    loss_f = jax.block_until_ready(
        audio_text_contrastive_loss_hn_fused(ae, te, logit_scale=2.0, row_tile=16))
    ra2t = 2.0 * lax.dot_general(ae, te, _DN_NT, preferred_element_type=jnp.float32)
    rt2a = 2.0 * lax.dot_general(te, ae, _DN_NT, preferred_element_type=jnp.float32)
    ref_f = _reference(ra2t, rt2a)
    assert jnp.allclose(loss_f, ref_f, **TOL), ("fused", loss_f, ref_f)

    print("KERNEL_OK")
</pallas_src>

<mosaic_0001>
module attributes {stable_mosaic.version = 11 : i64} {
  func.func @_rs_kernel(%arg0: i32, %arg1: memref<8x8xf32, #tpu.memory_space<vmem>>, %arg2: memref<8x8xf32, #tpu.memory_space<vmem>>, %arg3: memref<8x1xf32, #tpu.memory_space<vmem>>, %arg4: memref<8x1xf32, #tpu.memory_space<vmem>>) attributes {dimension_semantics = [#tpu.dimension_semantics<parallel>], iteration_bounds = array<i64: 1>, scalar_prefetch = 0 : i64, scratch_operands = 0 : i64, tpu.core_type = #tpu.core_type<tc>, window_params = [{transform_indices = @transform_0, window_bounds = array<i64: 8, 8>}, {transform_indices = @transform_1, window_bounds = array<i64: 8, 8>}, {transform_indices = @transform_2, window_bounds = array<i64: 8, 1>}, {transform_indices = @transform_3, window_bounds = array<i64: 8, 1>}]} {
    %c0 = arith.constant 0 : index
    %c0_0 = arith.constant 0 : index
    %0 = vector.load %arg1[%c0, %c0_0] : memref<8x8xf32, #tpu.memory_space<vmem>>, vector<8x8xf32>
    %cst = arith.constant dense<0xFF800000> : vector<8xf32>
    %1 = vector.multi_reduction <maximumf>, %0, %cst [1] : vector<8x8xf32> to vector<8xf32>
    %2 = vector.shape_cast %1 : vector<8xf32> to vector<8x1xf32>
    %3 = vector.broadcast %2 : vector<8x1xf32> to vector<8x8xf32>
    %4 = arith.subf %0, %3 : vector<8x8xf32>
    %cst_1 = arith.constant 1.500000e-01 : f32
    %5 = vector.broadcast %cst_1 : f32 to vector<8x8xf32>
    %6 = arith.mulf %4, %5 : vector<8x8xf32>
    %7 = math.exp %6 : vector<8x8xf32>
    %cst_2 = arith.constant dense<0.000000e+00> : vector<8xf32>
    %8 = vector.multi_reduction <add>, %7, %cst_2 [1] : vector<8x8xf32> to vector<8xf32>
    %9 = vector.shape_cast %8 : vector<8xf32> to vector<8x1xf32>
    %c0_3 = arith.constant 0 : index
    %c0_4 = arith.constant 0 : index
    %10 = vector.load %arg3[%c0_3, %c0_4] : memref<8x1xf32, #tpu.memory_space<vmem>>, vector<8x1xf32>
    tpu.vector_store %arg3[%c0_3, %c0_4], %9 {strides = array<i32>} : memref<8x1xf32, #tpu.memory_space<vmem>>, vector<8x1xf32>,
    %c0_5 = arith.constant 0 : index
    %c0_6 = arith.constant 0 : index
    %11 = vector.load %arg2[%c0_5, %c0_6] : memref<8x8xf32, #tpu.memory_space<vmem>>, vector<8x8xf32>
    %cst_7 = arith.constant dense<0xFF800000> : vector<8xf32>
    %12 = vector.multi_reduction <maximumf>, %11, %cst_7 [1] : vector<8x8xf32> to vector<8xf32>
    %13 = vector.shape_cast %12 : vector<8xf32> to vector<8x1xf32>
    %14 = vector.broadcast %13 : vector<8x1xf32> to vector<8x8xf32>
    %15 = arith.subf %11, %14 : vector<8x8xf32>
    %cst_8 = arith.constant 1.500000e-01 : f32
    %16 = vector.broadcast %cst_8 : f32 to vector<8x8xf32>
    %17 = arith.mulf %15, %16 : vector<8x8xf32>
    %18 = math.exp %17 : vector<8x8xf32>
    %cst_9 = arith.constant dense<0.000000e+00> : vector<8xf32>
    %19 = vector.multi_reduction <add>, %18, %cst_9 [1] : vector<8x8xf32> to vector<8xf32>
    %20 = vector.shape_cast %19 : vector<8xf32> to vector<8x1xf32>
    %c0_10 = arith.constant 0 : index
    %c0_11 = arith.constant 0 : index
    %21 = vector.load %arg4[%c0_10, %c0_11] : memref<8x1xf32, #tpu.memory_space<vmem>>, vector<8x1xf32>
    tpu.vector_store %arg4[%c0_10, %c0_11], %20 {strides = array<i32>} : memref<8x1xf32, #tpu.memory_space<vmem>>, vector<8x1xf32>,
    return
  }
  func.func @transform_0(%arg0: i32) -> (i32, i32) {
    %c0_i32 = arith.constant 0 : i32
    %c0_i32_0 = arith.constant 0 : i32
    return %arg0, %c0_i32 : i32, i32
  }
  func.func @transform_1(%arg0: i32) -> (i32, i32) {
    %c0_i32 = arith.constant 0 : i32
    %c0_i32_0 = arith.constant 0 : i32
    return %arg0, %c0_i32 : i32, i32
  }
  func.func @transform_2(%arg0: i32) -> (i32, i32) {
    %c0_i32 = arith.constant 0 : i32
    %c0_i32_0 = arith.constant 0 : i32
    return %arg0, %c0_i32 : i32, i32
  }
  func.func @transform_3(%arg0: i32) -> (i32, i32) {
    %c0_i32 = arith.constant 0 : i32
    %c0_i32_0 = arith.constant 0 : i32
    return %arg0, %c0_i32 : i32, i32
  }
}

</mosaic_0001>

<bundles_post_ra>
// kernel: tpu_custom_call.1
= control target key start
LH: loop header
LB: loop body
LE: loop exit
PB: predicated region body
PF: predicated region fallthrough
CT: control target
= control target key end

     0   :  { %9 = vsyncpa [#allocation3], 0  ;;  %s277_s0 = inlined_call_operand.hbm [shape: f32[8,8], index: 0, kind: input, shape index: {}]   ;;  %s278_s1 = inlined_call_operand.hbm [shape: f32[8,8], index: 1, kind: input, shape index: {}]   ;;  %s279_s2 = inlined_call_operand.hbm [shape: f32[8,1], index: 2, kind: output, shape index: {0}]   ;;  %s280_s3 = inlined_call_operand.hbm [shape: f32[8,1], index: 3, kind: output, shape index: {1}]  }
   0x1   :  { %10 = vsyncpa [#allocation6], 0 }
   0x2   :  { %11 = vsyncpa [#allocation4], 0 }
   0x3   :  { %12 = vsyncpa [#allocation9], 0  ;;  %s199_s12 = smov [#allocation2]   ;;  %s200_s14 = smov [#allocation5]  }
   0x4   :  { %s19_s13 = sshll.u32 %s199_s12, 4  ;;  %s29_s15 = sshll.u32 %s200_s14, 4  ;;  %s20_s13 = int_to_ptr.vmem [resolvable:$true] %s19_s13  ;;  %s30_s15 = int_to_ptr.vmem [resolvable:$true] %s29_s15 }
   0x5   :  { %s103_s18 = scalar_lea.hbm %s277_s0, 128 }
   0x6   :  { %p104_p0 = scmp.ne.s32.totalorder %s277_s0, %s103_s18  ;;  %p107_p1 = scmp.lt.u32.totalorder %s103_s18, %s277_s0 }
   0x8   :  { %p109_p2 = pnand %p107_p1, %p104_p0 }
   0xa   :  { %112 = shalt.err (!%p109_p2)
}
   0xb   :  { %s113_s23 = scalar_lea.vmem %s20_s13, 128  ;;  %p118_p4 = scmp.lt.s32.totalorder %s20_s13, %s20_s13 }
   0xc   :  { %p114_p3 = scmp.ne.s32.totalorder %s20_s13, %s113_s23  ;;  %p119_p5 = scmp.lt.s32.totalorder %s113_s23, %s113_s23 }
   0xe   :  { %p120_p6 = por %p119_p5, %p118_p4 }
  0x10   :  { %p121_p7 = pnand %p120_p6, %p114_p3 }
  0x12   :  { %124 = shalt.err (!%p121_p7)
}
  0x13   :  { %22 = dma.hbm_to_vmem [thread:$0]  %s277_s0, 128, %s20_s13, [#allocation3]  }
  0x14   :  { %s125_s28 = scalar_lea.hbm %s278_s1, 128 }
  0x15   :  { %p126_p8 = scmp.ne.s32.totalorder %s278_s1, %s125_s28  ;;  %p129_p9 = scmp.lt.u32.totalorder %s125_s28, %s278_s1 }
  0x17   :  { %p131_p10 = pnand %p129_p9, %p126_p8 }
  0x19   :  { %134 = shalt.err (!%p131_p10)
}
  0x1a   :  { %s135_s6 = scalar_lea.vmem %s30_s15, 128  ;;  %p140_p12 = scmp.lt.s32.totalorder %s30_s15, %s30_s15 }
  0x1b   :  { %p136_p11 = scmp.ne.s32.totalorder %s30_s15, %s135_s6  ;;  %p141_p13 = scmp.lt.s32.totalorder %s135_s6, %s135_s6 }
  0x1d   :  { %p142_p0 = por %p141_p13, %p140_p12 }
  0x1f   :  { %p143_p1 = pnand %p142_p0, %p136_p11 }
  0x21   :  { %146 = shalt.err (!%p143_p1)
}
  0x22   :  { %32 = dma.hbm_to_vmem [thread:$0]  %s278_s1, 128, %s30_s15, [#allocation6]  }
  0x23   :  { %191 = dma.done.wait [#allocation3], 128  }
  0x24   :  { %192 = vsyncadd [#allocation3], 4294967168 }
  0x25   :  { %193 = dma.done.wait [#allocation6], 128  }
  0x26   :  { %194 = vsyncadd [#allocation6], 4294967168  ;;  %vm40_vm0 = vcmask 64512   ;;  %v39_v0 = vld [vmem:[#allocation2] sm:$0xff]  ;;  %v53_v1 = vld [vmem:[#allocation5] sm:$0xff]  ;;  %s201_s1 = smov [#allocation7]  }
  0x27   :  { %v41_v2 = vsel %vm40_vm0, %v39_v0, -inf  ;;  %v54_v3 = vsel %vm40_vm0, %v53_v1, -inf  ;;  %s71_s8 = sshll.u32 %s201_s1, 4  ;;  %vm51_vm1 = vcmask 7168   ;;  %s202_s9 = smov [#allocation8]   ;;  %s72_s8 = int_to_ptr.vmem [resolvable:$true] %s71_s8 }
  0x28   :  { %42 = vmax.xlane.f32.xlu0 %v41_v2  ;;  %s81_s10 = sshll.u32 %s202_s9, 4  ;;  %s147_s11 = scalar_lea.vmem %s72_s8, 128  ;;  %s82_s10 = int_to_ptr.vmem [resolvable:$true] %s81_s10 }
  0x29   :  { %p148_p2 = scmp.ne.s32.totalorder %s72_s8, %s147_s11  ;;  %p152_p3 = scmp.lt.s32.totalorder %s72_s8, %s72_s8 }
  0x2a   :  { %p153_p4 = scmp.lt.s32.totalorder %s147_s11, %s147_s11 }
  0x2c   :  { %55 = vmax.xlane.f32.xlu0 %v54_v3  ;;  %p154_p5 = por %p153_p4, %p152_p3 }
  0x2e   :  { %p155_p6 = pnand %p154_p5, %p148_p2 }
  0xb5   :  { %v43_v4 = vpop.xlane.xlu0 %42 }
  0xb6   :  { %v44_v5 = vsub.f32 %v39_v0, %v43_v4 }
  0xb8   :  { %v45_v6 = vmul.f32 0.15, %v44_v5 }
  0xb9   :  { %v56_v7 = vpop.xlane.xlu0 %55 }
  0xba   :  { %v46_v8 = vmul.f32 1.442695, %v45_v6  ;;  %v57_v9 = vsub.f32 %v53_v1, %v56_v7 }
  0xbc   :  { %99 = vpow2.f32 %v46_v8  ;;  %v58_v10 = vmul.f32 0.15, %v57_v9 }
  0xbe   :  { %v59_v11 = vmul.f32 1.442695, %v58_v10 }
  0xc0   :  { %101 = vpow2.f32 %v59_v11 }
  0xc6   :  { %v100_v12 = vpop.eup %99 }
  0xc7   :  { %v48_v13 = vsel %vm40_vm0, %v100_v12, 0.0 }
  0xc8   :  { %49 = vadd.xlane.f32.xlu1 %v48_v13 }
  0xca   :  { %v102_v14 = vpop.eup %101 }
  0xcb   :  { %v61_v15 = vsel %vm40_vm0, %v102_v14, 0.0 }
  0xcc   :  { %62 = vadd.xlane.f32.xlu1 %v61_v15 }
 0x155   :  { %v50_v16 = vpop.xlane.xlu1 %49 }
 0x156   :  { %52 = vst.msk [vmem:[#allocation7] sm:$0xff] %vm51_vm1, %v50_v16 }
 0x157   :  { %158 = shalt.err (!%p155_p6)
}
 0x158   :  { %s159_s14 = scalar_lea.hbm %s279_s2, 128 }
 0x159   :  { %p160_p7 = scmp.ne.s32.totalorder %s279_s2, %s159_s14  ;;  %p163_p8 = scmp.lt.u32.totalorder %s159_s14, %s279_s2 }
 0x15b   :  { %p165_p9 = pnand %p163_p8, %p160_p7 }
 0x15d   :  { %168 = shalt.err (!%p165_p9)
}
 0x15e   :  { %74 = dma.vmem_to_hbm [thread:$0]  %s72_s8, 128, %s279_s2, [#allocation4]   ;;  %v63_v17 = vpop.xlane.xlu1 %62 }
 0x15f   :  { %64 = vst.msk [vmem:[#allocation8] sm:$0xff] %vm51_vm1, %v63_v17  ;;  %s169_s21 = scalar_lea.vmem %s82_s10, 128  ;;  %p174_p11 = scmp.lt.s32.totalorder %s82_s10, %s82_s10 }
 0x160   :  { %p170_p10 = scmp.ne.s32.totalorder %s82_s10, %s169_s21  ;;  %p175_p12 = scmp.lt.s32.totalorder %s169_s21, %s169_s21 }
 0x162   :  { %p176_p13 = por %p175_p12, %p174_p11 }
 0x164   :  { %p177_p0 = pnand %p176_p13, %p170_p10 }
 0x166   :  { %180 = shalt.err (!%p177_p0)
}
 0x167   :  { %s181_s24 = scalar_lea.hbm %s280_s3, 128 }
 0x168   :  { %p182_p1 = scmp.ne.s32.totalorder %s280_s3, %s181_s24  ;;  %p185_p2 = scmp.lt.u32.totalorder %s181_s24, %s280_s3 }
 0x16a   :  { %p187_p3 = pnand %p185_p2, %p182_p1 }
 0x16c   :  { %190 = shalt.err (!%p187_p3)
}
 0x16d   :  { %84 = dma.vmem_to_hbm [thread:$0]  %s82_s10, 128, %s280_s3, [#allocation9]  }
 0x16e   :  { %195 = dma.done.wait [#allocation4], 128  }
 0x16f   :  { %196 = vsyncadd [#allocation4], 4294967168 }
 0x170   :  { %197 = dma.done.wait [#allocation9], 128  }
 0x171   :  { %198 = vsyncadd [#allocation9], 4294967168 }
 0x172   :  { %91 = vsyncpa [#allocation3], 1 }
 0x173   :  { %92 = vsyncpa [#allocation6], 1 }
 0x174   :  { %93 = vsyncpa [#allocation4], 1 }
 0x175   :  { %94 = vsyncpa [#allocation9], 1 }

</bundles_post_ra>
